<compile_context>
chip_gen: v7x
topology: tpu7x:2x2x1
jax: 0.10.0
libtpu: 0.0.40
codegen_flags: <defaults>
</compile_context>

<pallas_src>
import jax
import jax.numpy as jnp
from jax.experimental import pallas as pl
from jax.experimental.pallas import tpu as pltpu

D = 20
H = 15
N = 1
O = 10
T = 10


def _birnn_kernel(x_ref, k_ref, y_ref):
    # Single grid point; both operands fully VMEM-resident (< 20 KiB total).
    # One MXU dot: (N, T*D) x (T*D, O) -> (N, O).
    y_ref[...] = jnp.dot(x_ref[...], k_ref[...],
                         preferred_element_type=jnp.float32)


def _fold_weights(wxh_f, whh_f, wxh_b, whh_b, who, t_len):
    """Fold the entire linear bidirectional recurrence into one (T*D, O) matrix."""
    f32 = jnp.float32
    wxh_f = wxh_f.astype(f32)
    whh_f = whh_f.astype(f32)
    wxh_b = wxh_b.astype(f32)
    whh_b = whh_b.astype(f32)
    who = who.astype(f32)
    h_dim = whh_f.shape[0]

    eye = jnp.eye(h_dim, dtype=f32)
    pow_f = [eye]          # pow_f[k] = Whh_f^k
    pow_b = [eye]          # pow_b[k] = Whh_b^k
    for _ in range(t_len - 1):
        pow_f.append(pow_f[-1] @ whh_f)
        pow_b.append(pow_b[-1] @ whh_b)

    blocks = []
    for t in range(t_len):
        # x[:, t] contributes through Whh_f^(T-1-t) on the forward path and,
        # because the module reads x[:, -t, :], through Whh_b^((t-1) % T) on
        # the backward path.
        g = wxh_f @ pow_f[t_len - 1 - t] + wxh_b @ pow_b[(t - 1) % t_len]
        blocks.append(g @ who)
    return jnp.concatenate(blocks, axis=0)             # (T*D, O)


@jax.jit
def birnn_forward(x, wxh_f, whh_f, wxh_b, whh_b, who):
    n, t_len, d = x.shape
    o = who.shape[1]

    k_mat = _fold_weights(wxh_f, whh_f, wxh_b, whh_b, who, t_len)  # (T*D, O)
    x_flat = x.reshape(n, t_len * d).astype(jnp.float32)           # contiguous

    vmem = pl.BlockSpec(memory_space=pltpu.MemorySpace.VMEM)
    return pl.pallas_call(
        _birnn_kernel,
        out_shape=jax.ShapeDtypeStruct((n, o), jnp.float32),
        in_specs=[vmem, vmem],
        out_specs=vmem,
    )(x_flat, k_mat)


def birnn_reference(x, wxh_f, whh_f, wxh_b, whh_b, who):
    # Pure-JAX reference mirroring the PyTorch module line for line.
    _, t_len, _ = x.shape
    h_dim = wxh_f.shape[1]
    h_f = jnp.zeros((h_dim,), jnp.float32)
    h_b = jnp.zeros((h_dim,), jnp.float32)
    for t in range(t_len):
        h_f = x[:, t, :] @ wxh_f + h_f @ whh_f
        h_b = x[:, (-t) % t_len, :] @ wxh_b + h_b @ whh_b
    return (h_f + h_b) @ who


if __name__ == "__main__":
    key = jax.random.PRNGKey(0)
    kx, k1, k2, k3, k4, k5, kb = jax.random.split(key, 7)

    x = jax.random.normal(kx, (N, T, D), dtype=jnp.float32)
    forward_Wxh = jax.random.normal(k1, (D, H), dtype=jnp.float32)
    forward_Whh = jax.random.normal(k2, (H, H), dtype=jnp.float32)
    backward_Wxh = jax.random.normal(k3, (D, H), dtype=jnp.float32)
    backward_Whh = jax.random.normal(k4, (H, H), dtype=jnp.float32)
    Who = jax.random.normal(k5, (H, O), dtype=jnp.float32)

    weights = (forward_Wxh, forward_Whh, backward_Wxh, backward_Whh, Who)

    # Module-sized case (N=1).  The 10-step unnormalized recurrence with
    # N(0,1) weights amplifies magnitudes to ~1e5-1e6, so compare with a
    # scale-aware relative error (pure f32 reordering effects otherwise).
    y = jax.block_until_ready(birnn_forward(x, *weights))
    y_ref = birnn_reference(x, *weights)
    assert y.shape == (N, O)
    scale = float(jnp.max(jnp.abs(y_ref)))
    err = float(jnp.max(jnp.abs(y - y_ref)))
    assert err <= 1e-4 * max(scale, 1.0), f"mismatch: err={err}, scale={scale}"

    # Batched path (review item 2): extra sequences ride the same single dot.
    xb = jax.random.normal(kb, (8, T, D), dtype=jnp.float32)
    yb = jax.block_until_ready(birnn_forward(xb, *weights))
    yb_ref = birnn_reference(xb, *weights)
    assert yb.shape == (8, O)
    scale_b = float(jnp.max(jnp.abs(yb_ref)))
    err_b = float(jnp.max(jnp.abs(yb - yb_ref)))
    assert err_b <= 1e-4 * max(scale_b, 1.0), f"mismatch: err={err_b}"

    print("KERNEL_OK")
</pallas_src>

<mosaic_0001>
module attributes {stable_mosaic.version = 11 : i64} {
  func.func @_birnn_kernel(%arg0: memref<1x200xf32, #tpu.memory_space<vmem>>, %arg1: memref<200x10xf32, #tpu.memory_space<vmem>>, %arg2: memref<1x10xf32, #tpu.memory_space<vmem>>) attributes {dimension_semantics = [], scalar_prefetch = 0 : i64, scratch_operands = 0 : i64, tpu.core_type = #tpu.core_type<tc>} {
    %c0 = arith.constant 0 : index
    %c0_0 = arith.constant 0 : index
    %0 = vector.load %arg0[%c0, %c0_0] : memref<1x200xf32, #tpu.memory_space<vmem>>, vector<1x200xf32>
    %c0_1 = arith.constant 0 : index
    %c0_2 = arith.constant 0 : index
    %1 = vector.load %arg1[%c0_1, %c0_2] : memref<200x10xf32, #tpu.memory_space<vmem>>, vector<200x10xf32>
    %cst = arith.constant dense<0.000000e+00> : vector<1x10xf32>
    %2 = tpu.matmul %0, %1, %cst {dimension_numbers = #tpu.dot_dimension_numbers<[1], [0], [0], [1], [0, 0, 1, 1], [], []>} : vector<1x200xf32>, vector<200x10xf32>, vector<1x10xf32> -> vector<1x10xf32>
    %c0_3 = arith.constant 0 : index
    %c0_4 = arith.constant 0 : index
    %3 = vector.load %arg2[%c0_3, %c0_4] : memref<1x10xf32, #tpu.memory_space<vmem>>, vector<1x10xf32>
    tpu.vector_store %arg2[%c0_3, %c0_4], %2 {strides = array<i32>} : memref<1x10xf32, #tpu.memory_space<vmem>>, vector<1x10xf32>,
    return
  }
}

</mosaic_0001>

<bundles_post_ra>
// kernel: birnn_forward.1
= control target key start
LH: loop header
LB: loop body
LE: loop exit
PB: predicated region body
PF: predicated region fallthrough
CT: control target
= control target key end

     0   :  { %v39_v3 = vlaneseq  ;;  %v201_v4 = vmov 0.0|0.0   ;;  %vm48_vm0 = vcmask 588800   ;;  %s325_s0 = inlined_call_operand.vmem [shape: f32[1,200], index: 0, kind: input, shape index: {}]   ;;  %s326_s1 = inlined_call_operand.vmem [shape: f32[200,10], index: 1, kind: input, shape index: {}]   ;;  %s327_s2 = inlined_call_operand.hbm [shape: f32[1,10], index: 2, kind: output, shape index: {}]  }
   0x1   :  { %v13_v0 = vld [vmem:[%s326_s1] sm:$0xff]  ;;  %v14_v1 = vld [vmem:[%s326_s1 + $0x8] sm:$0xff]  ;;  %v15_v2 = vld [vmem:[%s326_s1 + $0x10] sm:$0xff]  ;;  %138 = vmatprep.subr.bf16.mxu0 %v201_v4 }
   0x2   :  { %v139_v5 = vpack.c.bf16 %v14_v1, %v13_v0  ;;  %v16_v6 = vld [vmem:[%s326_s1 + $0x18] sm:$0xff]  ;;  %v232_v7 = vshrl.u32 %v39_v3, 7  ;;  %v17_v9 = vld [vmem:[%s326_s1 + $0x20] sm:$0xff]  ;;  %v18_v10 = vld [vmem:[%s326_s1 + $0x28] sm:$0xff] }
   0x3   :  { %v142_v8 = vpack.c.bf16 %v16_v6, %v15_v2  ;;  %v145_v12 = vpack.c.bf16 %v18_v10, %v17_v9  ;;  %v19_v13 = vld [vmem:[%s326_s1 + $0x30] sm:$0xff]  ;;  %v20_v14 = vld [vmem:[%s326_s1 + $0x38] sm:$0xff]  ;;  %v12_v15 = vld [vmem:[%s325_s0] sm:$0x3] }
   0x4   :  { %140 = vmatpush1.bf16.msra.mxu0 %v139_v5  ;;  %v45_v11 = vsub.s32 1, %v232_v7 }
   0x5   :  { %141 = vmatprep.subr.bf16.mxu0 %v201_v4 }
   0x8   :  { %143 = vmatpush1.bf16.msra.mxu0 %v142_v8 }
   0x9   :  { %144 = vmatprep.subr.bf16.mxu0 %v201_v4 }
   0xa   :  { %7 = vsyncpa [#allocation3], 0  ;;  %v46_v16 = vrot.slane %v12_v15, %v45_v11  ;;  %v148_v17 = vpack.c.bf16 %v20_v14, %v19_v13  ;;  %v21_v18 = vld [vmem:[%s326_s1 + $0x40] sm:$0xff]  ;;  %v22_v19 = vld [vmem:[%s326_s1 + $0x48] sm:$0xff]  ;;  %v41_v42 = vsub.s32 0, %v232_v7  ;;  %v202_v43 = vmov 0.0  }
   0xb   :  { %v151_v20 = vpack.c.bf16 %v22_v19, %v21_v18  ;;  %v23_v21 = vld [vmem:[%s326_s1 + $0x50] sm:$0xff]  ;;  %v24_v22 = vld [vmem:[%s326_s1 + $0x58] sm:$0xff]  ;;  %v25_v24 = vld [vmem:[%s326_s1 + $0x60] sm:$0xff]  ;;  %s203_s3 = smov [#allocation2]   ;;  %vm121_vm1 = vcmask 73728  }
   0xc   :  { %146 = vmatpush1.bf16.msra.mxu0 %v145_v12  ;;  %137 = vmatprep.mubr.msk.f32.mxu0 %vm48_vm0, %v46_v16  ;;  %v154_v23 = vpack.c.bf16 %v24_v22, %v23_v21  ;;  %v26_v25 = vld [vmem:[%s326_s1 + $0x68] sm:$0xff]  ;;  %v27_v27 = vld [vmem:[%s326_s1 + $0x70] sm:$0xff]  ;;  %v28_v28 = vld [vmem:[%s326_s1 + $0x78] sm:$0xff]  ;;  %v42_v45 = vrot.slane %v12_v15, %v41_v42  ;;  %s129_s4 = sshll.u32 %s203_s3, 4  ;;  %s130_s4 = int_to_ptr.vmem [resolvable:$true] %s129_s4 }
   0xd   :  { %147 = vmatprep.subr.bf16.mxu0 %v201_v4  ;;  %v157_v26 = vpack.c.bf16 %v26_v25, %v25_v24  ;;  %v160_v29 = vpack.c.bf16 %v28_v28, %v27_v27  ;;  %v29_v30 = vld [vmem:[%s326_s1 + $0x80] sm:$0xff]  ;;  %v30_v31 = vld [vmem:[%s326_s1 + $0x88] sm:$0xff]  ;;  %v31_v33 = vld [vmem:[%s326_s1 + $0x90] sm:$0xff]  ;;  %s177_s5 = scalar_lea.vmem %s130_s4, 16  ;;  %s181_s6 = scalar_lea.vmem %s130_s4, 32 }
   0xe   :  { %v163_v32 = vpack.c.bf16 %v30_v31, %v29_v30  ;;  %v32_v34 = vld [vmem:[%s326_s1 + $0x98] sm:$0xff]  ;;  %v33_v36 = vld [vmem:[%s326_s1 + $0xa0] sm:$0xff]  ;;  %v34_v37 = vld [vmem:[%s326_s1 + $0xa8] sm:$0xff]  ;;  %p178_p0 = scmp.ne.s32.totalorder %s130_s4, %s177_s5  ;;  %p182_p1 = scmp.lt.s32.totalorder %s130_s4, %s130_s4 }
   0xf   :  { %v166_v35 = vpack.c.bf16 %v32_v34, %v31_v33  ;;  %v169_v38 = vpack.c.bf16 %v34_v37, %v33_v36  ;;  %v35_v39 = vld [vmem:[%s326_s1 + $0xb0] sm:$0xff]  ;;  %v36_v40 = vld [vmem:[%s326_s1 + $0xb8] sm:$0xff]  ;;  %v37_v44 = vld [vmem:[%s326_s1 + $0xc0] sm:$0xff]  ;;  %p183_p2 = scmp.lt.s32.totalorder %s181_s6, %s177_s5 }
  0x10   :  { %149 = vmatpush1.bf16.msra.mxu0 %v148_v17  ;;  %v172_v41 = vpack.c.bf16 %v36_v40, %v35_v39 }
  0x11   :  { %150 = vmatprep.subr.bf16.mxu0 %v201_v4  ;;  %p184_p3 = por %p183_p2, %p182_p1 }
  0x13   :  { %p185_p4 = pnand %p184_p3, %p178_p0 }
  0x14   :  { %152 = vmatpush1.bf16.msra.mxu0 %v151_v20 }
  0x15   :  { %153 = vmatprep.subr.bf16.mxu0 %v201_v4 }
  0x18   :  { %155 = vmatpush1.bf16.msra.mxu0 %v154_v23 }
  0x19   :  { %156 = vmatprep.subr.bf16.mxu0 %v201_v4 }
  0x1c   :  { %158 = vmatpush1.bf16.msra.mxu0 %v157_v26 }
  0x1d   :  { %159 = vmatprep.subr.bf16.mxu0 %v201_v4 }
  0x20   :  { %161 = vmatpush1.bf16.msra.mxu0 %v160_v29 }
  0x21   :  { %162 = vmatprep.subr.bf16.mxu0 %v201_v4 }
  0x24   :  { %164 = vmatpush1.bf16.msra.mxu0 %v163_v32 }
  0x25   :  { %165 = vmatprep.subr.bf16.mxu0 %v201_v4 }
  0x28   :  { %167 = vmatpush1.bf16.msra.mxu0 %v166_v35 }
  0x29   :  { %168 = vmatprep.subr.bf16.mxu0 %v201_v4 }
  0x2c   :  { %170 = vmatpush1.bf16.msra.mxu0 %v169_v38 }
  0x2d   :  { %171 = vmatprep.subr.bf16.mxu0 %v201_v4 }
  0x30   :  { %173 = vmatpush1.bf16.msra.mxu0 %v172_v41 }
  0x31   :  { %99 = vmatprep.subr.mxu0 %v202_v43 }
  0x34   :  { %100 = vmatpush1.msra.mxu0 %v37_v44 }
  0x35   :  { %116 = vmatmul.mubr.f32.vlgmr.msra.gmra.mrb[0].mxu0 %v42_v45 }
 0x108   :  { %v117_v46 = vpop.f32.mrb[0].mxu0 }
 0x109   :  { %122 = vst.msk [vmem:[#allocation2] sm:$0x1] %vm121_vm1, %v117_v46  ;;  %v119_v47 = vpop.f32.mrb[1].mxu0 }
 0x10a   :  { %188 = shalt.err (!%p185_p4)
}
 0x10b   :  { %s189_s8 = scalar_lea.hbm %s327_s2, 16 }
 0x10c   :  { %p190_p5 = scmp.ne.s32.totalorder %s327_s2, %s189_s8  ;;  %p193_p6 = scmp.lt.u32.totalorder %s189_s8, %s327_s2 }
 0x10e   :  { %p195_p7 = pnand %p193_p6, %p190_p5 }
 0x110   :  { %198 = shalt.err (!%p195_p7)
}
 0x111   :  { %132 = dma.vmem_to_hbm [thread:$0]  %s130_s4, 16, %s327_s2, [#allocation3]  }
 0x112   :  { %199 = dma.done.wait [#allocation3], 16  }
 0x113   :  { %200 = vsyncadd [#allocation3], 4294967280 }
 0x114   :  { %136 = vsyncpa [#allocation3], 1 }

</bundles_post_ra>
